<compile_context>
chip_gen: v7x
topology: tpu7x:2x2x1
jax: 0.10.0
libtpu: 0.0.40
codegen_flags: <defaults>
</compile_context>

<pallas_src>
import functools
import math

import jax
import jax.numpy as jnp
from jax.experimental import pallas as pl
from jax.experimental.pallas import tpu as pltpu

D_MODEL = 32
MAX_LEN = 15
PE_BATCH = 60          # leading dim of the PyTorch registered buffer (expand() view)
LANES = 128
GROUP = LANES // math.gcd(MAX_LEN * D_MODEL, LANES)   # 4 batches per lane-dense group
ROWS = (GROUP * MAX_LEN * D_MODEL) // LANES            # 15


def _build_pe_table(d_model=D_MODEL, max_len=MAX_LEN):
    """Base (max_len, d_model) sinusoidal table, identical to PyTorch __init__."""
    position = jnp.arange(0, max_len, dtype=jnp.float32)[:, None]             # (L, 1)
    div_term = jnp.exp(
        jnp.arange(0, d_model, 2, dtype=jnp.float32)
        * (-math.log(10000.0) / d_model)
    )                                                                          # (D/2,)
    angles = position * div_term                                               # (L, D/2)
    # interleave: even columns <- sin, odd columns <- cos
    pe = jnp.stack([jnp.sin(angles), jnp.cos(angles)], axis=-1)                # (L, D/2, 2)
    return pe.reshape(max_len, d_model)                                        # (L, D)


@functools.lru_cache(maxsize=None)
def _pe_lane_dense():
    """Precomputed lane-dense (15, 128) tiled pe block (built once, cached).

    pe_lane[row, lane] == pe_flat[(row * 128 + lane) % 480], i.e. 4 consecutive
    batch elements' worth of the flattened (15*32,) table per vreg row, which
    matches a row-major reshape of (4, 15, 32) -> (15, 128).
    """
    pe_flat = _build_pe_table().reshape(1, MAX_LEN * D_MODEL)                  # (1, 480)
    return jnp.broadcast_to(pe_flat, (GROUP, MAX_LEN * D_MODEL)).reshape(ROWS, LANES)


def _add_pe_kernel(x_ref, pe_ref, o_ref):
    # x_ref: (G, 15, 128); pe_ref: (15, 128).  Broadcast-add over leading axis.
    o_ref[...] = (x_ref[...] + pe_ref[...][None, :, :]).astype(o_ref.dtype)


_VMEM_SPEC = pl.BlockSpec(memory_space=pltpu.MemorySpace.VMEM)


def positional_encoding_15(x, pe_lane=None):
    """y = x + pe[:x.shape[0]] via a single gridless Pallas TPU kernel.

    x:       (B, 15, 32), B <= 60
    pe_lane: optional precomputed (15, 128) lane-dense pe block
    """
    B, L, D = x.shape
    assert (L, D) == (MAX_LEN, D_MODEL)
    assert B <= PE_BATCH          # matches self.pe[:x.size(0), :]

    if pe_lane is None:
        pe_lane = _pe_lane_dense()
    pe_lane = pe_lane.astype(x.dtype)

    # Always take the lane-dense path: pad B up to a multiple of 4 if needed.
    b_pad = ((B + GROUP - 1) // GROUP) * GROUP
    if b_pad != B:
        x = jnp.pad(x, ((0, b_pad - B), (0, 0), (0, 0)))
    g = b_pad // GROUP
    x_in = x.reshape(g, ROWS, LANES)                  # free row-major reshape

    out = pl.pallas_call(
        _add_pe_kernel,
        out_shape=jax.ShapeDtypeStruct(x_in.shape, x_in.dtype),
        in_specs=[_VMEM_SPEC, _VMEM_SPEC],
        out_specs=_VMEM_SPEC,
        input_output_aliases={0: 0},                  # donate x_in -> output
    )(x_in, pe_lane)

    out = out.reshape(b_pad, L, D)
    return out[:B] if b_pad != B else out


if __name__ == "__main__":
    key = jax.random.PRNGKey(0)
    pe_table = _build_pe_table()
    pe_lane = _pe_lane_dense()

    fwd = jax.jit(positional_encoding_15)

    # Lane-dense path (B multiple of 4).
    B = 4
    x = jax.random.normal(key, (B, MAX_LEN, D_MODEL), dtype=jnp.float32)
    y = jax.block_until_ready(fwd(x, pe_lane))
    y_ref = x + pe_table[None, :, :]
    assert y.shape == (B, MAX_LEN, D_MODEL)
    assert jnp.allclose(y, y_ref, atol=1e-6, rtol=1e-6)

    # Padded path (B not a multiple of 4) -- still lane-dense inside.
    x2 = jax.random.normal(jax.random.PRNGKey(1), (3, MAX_LEN, D_MODEL),
                           dtype=jnp.float32)
    y2 = jax.block_until_ready(fwd(x2, pe_lane))
    assert y2.shape == (3, MAX_LEN, D_MODEL)
    assert jnp.allclose(y2, x2 + pe_table[None, :, :], atol=1e-6, rtol=1e-6)

    print("KERNEL_OK")
</pallas_src>

<mosaic_0001>
module attributes {stable_mosaic.version = 11 : i64} {
  func.func @_add_pe_kernel(%arg0: memref<1x15x128xf32, #tpu.memory_space<vmem>>, %arg1: memref<15x128xf32, #tpu.memory_space<vmem>>, %arg2: memref<1x15x128xf32, #tpu.memory_space<vmem>>) attributes {dimension_semantics = [], scalar_prefetch = 0 : i64, scratch_operands = 0 : i64, tpu.core_type = #tpu.core_type<tc>} {
    %c0 = arith.constant 0 : index
    %c0_0 = arith.constant 0 : index
    %c0_1 = arith.constant 0 : index
    %0 = vector.load %arg0[%c0, %c0_0, %c0_1] : memref<1x15x128xf32, #tpu.memory_space<vmem>>, vector<1x15x128xf32>
    %c0_2 = arith.constant 0 : index
    %c0_3 = arith.constant 0 : index
    %1 = vector.load %arg1[%c0_2, %c0_3] : memref<15x128xf32, #tpu.memory_space<vmem>>, vector<15x128xf32>
    %2 = vector.shape_cast %1 : vector<15x128xf32> to vector<1x15x128xf32>
    %3 = arith.addf %0, %2 : vector<1x15x128xf32>
    %c0_4 = arith.constant 0 : index
    %c0_5 = arith.constant 0 : index
    %c0_6 = arith.constant 0 : index
    %4 = vector.load %arg2[%c0_4, %c0_5, %c0_6] : memref<1x15x128xf32, #tpu.memory_space<vmem>>, vector<1x15x128xf32>
    tpu.vector_store %arg2[%c0_4, %c0_5, %c0_6], %3 {strides = array<i32>} : memref<1x15x128xf32, #tpu.memory_space<vmem>>, vector<1x15x128xf32>,
    return
  }
}

</mosaic_0001>

<bundles_post_ra>
// kernel: positional_encoding_15.1
= control target key start
LH: loop header
LB: loop body
LE: loop exit
PB: predicated region body
PF: predicated region fallthrough
CT: control target
= control target key end

     0   :  { %s56_s0 = inlined_call_operand.vmem [shape: f32[1,15,128], index: 0, kind: input, shape index: {}, may-alias: {0,2}]   ;;  %s57_s1 = inlined_call_operand.vmem [shape: f32[15,128], index: 1, kind: input, shape index: {}]   ;;  %s58_s2 = inlined_call_operand.vmem [shape: f32[1,15,128], index: 2, kind: output, shape index: {}, may-alias: {0,2}]  }
   0x1   :  { %v11_v0 = vld [vmem:[%s56_s0] sm:$0xff]  ;;  %v12_v2 = vld [vmem:[%s56_s0 + $0x8] sm:$0x7f] }
   0x2   :  { %v13_v1 = vld [vmem:[%s57_s1] sm:$0xff]  ;;  %v14_v4 = vld [vmem:[%s57_s1 + $0x8] sm:$0x7f] }
   0x3   :  { %v15_v3 = vadd.f32 %v13_v1, %v11_v0  ;;  %v16_v5 = vadd.f32 %v14_v4, %v12_v2 }
   0x5   :  { %17 = vst [vmem:[%s58_s2] sm:$0xff] %v15_v3  ;;  %18 = vst [vmem:[%s58_s2 + $0x8] sm:$0x7f] %v16_v5 }

</bundles_post_ra>
